<compile_context>
chip_gen: v7x
topology: tpu7x:2x2x1
jax: 0.10.0
libtpu: 0.0.40
codegen_flags: <defaults>
</compile_context>

<pallas_src>
import functools
import math

import jax
import jax.numpy as jnp
from jax.experimental import pallas as pl
from jax.experimental.pallas import tpu as pltpu

_LANES = 128
_MAX_BLOCK_ROWS = 2048           # (2048,128) f32 block = 1 MiB
_CONST_PI = math.pi              # torch.acos(torch.zeros(1)).item() * 2
_VMEM_LIMIT = 32 * 1024 * 1024   # conservative for v7x (64 MiB physical)


# ----------------------------- shared math -----------------------------------


def _zinorm_elementwise(y_pred, theta, pi, y_true, *, eps, lamda):
    # norm case (theta clamped at 1e6)
    theta_c = jnp.minimum(theta, 1.0e6)
    t1n = -jnp.log(1.0 - pi)
    t2n = (-0.5 * jnp.log(2.0 * _CONST_PI * theta_c)
           - jnp.square(y_true - y_pred) / (2.0 * theta_c + eps))
    norm_case = t1n - t2n
    # zero case (unclamped theta; tensor `pi` inside the sqrt, as in the reference)
    zero_norm = (1.0 / jnp.sqrt(2.0 * pi * theta + eps)) * jnp.exp(
        -0.5 * jnp.square(0.0 - y_pred) / theta + eps)
    zero_case = -jnp.log(pi + (1.0 - pi) * zero_norm + eps)
    t1 = jnp.where(y_true < 1e-08, zero_case, norm_case)
    t2 = lamda * jnp.square(pi)
    return t1 + t2


# ----------------------------- kernels ----------------------------------------


def _zinorm_none_kernel(yp_ref, th_ref, pi_ref, yt_ref, o_ref, *, eps, lamda):
    o_ref[...] = _zinorm_elementwise(
        yp_ref[...], th_ref[...], pi_ref[...], yt_ref[...], eps=eps, lamda=lamda)


def _zinorm_reduce_kernel(n_ref, yp_ref, th_ref, pi_ref, yt_ref, *rest,
                          eps, lamda, has_mask):
    if has_mask:
        m_ref, sum_ref, cnt_ref, acc_s, acc_c = rest
    else:
        sum_ref, cnt_ref, acc_s, acc_c = rest

    i = pl.program_id(0)

    @pl.when(i == 0)
    def _():
        acc_s[...] = jnp.zeros_like(acc_s)
        acc_c[...] = jnp.zeros_like(acc_c)

    br = yp_ref.shape[0]
    loss = _zinorm_elementwise(
        yp_ref[...], th_ref[...], pi_ref[...], yt_ref[...], eps=eps, lamda=lamda)

    # validity of the ragged tail computed in-kernel from n (no ones stream)
    row = jax.lax.broadcasted_iota(jnp.int32, (br, _LANES), 0)
    col = jax.lax.broadcasted_iota(jnp.int32, (br, _LANES), 1)
    flat_idx = (i * br + row) * _LANES + col
    w = (flat_idx < n_ref[0]).astype(jnp.float32)
    if has_mask:
        w = w * m_ref[...]

    # select (not multiply): padded lanes can hold NaN/Inf and must not poison sums
    loss_m = jnp.where(w > 0.5, loss, 0.0)

    # vreg-shaped partial accumulation; cross-lane reduce deferred to epilogue
    acc_s[...] += loss_m.reshape(-1, 8, _LANES).sum(axis=0)
    acc_c[...] += w.reshape(-1, 8, _LANES).sum(axis=0)

    @pl.when(i == pl.num_programs(0) - 1)
    def _():
        sum_ref[...] = jnp.sum(acc_s[...]).reshape(1, 1)
        cnt_ref[...] = jnp.sum(acc_c[...]).reshape(1, 1)


# ----------------------------- wrapper -----------------------------------------


def _round_up(x, m):
    return ((x + m - 1) // m) * m


def _flatten_pad(x, rows):
    flat = x.reshape(-1)
    pad = rows * _LANES - flat.shape[0]
    if pad:
        flat = jnp.pad(flat, (0, pad))
    return flat.reshape(rows, _LANES)


def zinorm_loss(y_pred, theta, pi, y_true, lamda, mask=None, *,
                reduction="none", eps=1e-10):
    y_pred = jnp.asarray(y_pred, jnp.float32)
    theta = jnp.asarray(theta, jnp.float32)
    pi = jnp.asarray(pi, jnp.float32)
    y_true = jnp.asarray(y_true, jnp.float32)
    lamda = float(lamda)
    orig_shape = y_pred.shape

    n = int(y_pred.size)
    rows_needed = max(-(-n // _LANES), 1)
    block_rows = min(_round_up(rows_needed, 8), _MAX_BLOCK_ROWS)
    rows = _round_up(rows_needed, block_rows)
    grid = (rows // block_rows,)

    if reduction == "none":
        if mask is not None:
            # TODO(synk): torch.masked_select yields a data-dependent output
            # shape; no clean Pallas equivalent for reduction='none' with mask.
            raise NotImplementedError("mask with reduction='none' not supported")

        tile_spec = pl.BlockSpec((block_rows, _LANES), lambda i: (i, 0))
        inputs = [_flatten_pad(t, rows) for t in (y_pred, theta, pi, y_true)]

        out2 = pl.pallas_call(
            functools.partial(_zinorm_none_kernel, eps=eps, lamda=lamda),
            out_shape=jax.ShapeDtypeStruct((rows, _LANES), jnp.float32),
            grid_spec=pltpu.PrefetchScalarGridSpec(
                num_scalar_prefetch=0,
                grid=grid,
                in_specs=[tile_spec] * 4,
                out_specs=tile_spec,
            ),
            compiler_params=pltpu.CompilerParams(
                dimension_semantics=("parallel",),
                vmem_limit_bytes=_VMEM_LIMIT,
            ),
        )(*inputs)
        flat = out2.reshape(-1)
        if flat.shape[0] != n:
            flat = flat[:n]
        return flat.reshape(orig_shape)

    elif reduction in ("mean", "sum"):
        has_mask = mask is not None
        inputs = [_flatten_pad(t, rows) for t in (y_pred, theta, pi, y_true)]
        if has_mask:
            inputs.append(_flatten_pad(jnp.asarray(mask, jnp.float32), rows))

        tile_spec = pl.BlockSpec((block_rows, _LANES), lambda i, n_sm: (i, 0))
        scalar_spec = pl.BlockSpec((1, 1), lambda i, n_sm: (0, 0))
        n_arr = jnp.array([n], jnp.int32)

        s, c = pl.pallas_call(
            functools.partial(_zinorm_reduce_kernel, eps=eps, lamda=lamda,
                              has_mask=has_mask),
            out_shape=(
                jax.ShapeDtypeStruct((1, 1), jnp.float32),
                jax.ShapeDtypeStruct((1, 1), jnp.float32),
            ),
            grid_spec=pltpu.PrefetchScalarGridSpec(
                num_scalar_prefetch=1,
                grid=grid,
                in_specs=[tile_spec] * len(inputs),
                out_specs=(scalar_spec, scalar_spec),
                scratch_shapes=[
                    pltpu.VMEM((8, _LANES), jnp.float32),
                    pltpu.VMEM((8, _LANES), jnp.float32),
                ],
            ),
            compiler_params=pltpu.CompilerParams(
                dimension_semantics=("arbitrary",),
                vmem_limit_bytes=_VMEM_LIMIT,
            ),
        )(n_arr, *inputs)

        if reduction == "mean":
            return (s[0, 0] / c[0, 0]).astype(jnp.float32)
        return s[0, 0].astype(jnp.float32)

    else:
        raise ValueError(f"unknown reduction {reduction!r}")


# ----------------------------- main --------------------------------------------


if __name__ == "__main__":
    key = jax.random.PRNGKey(0)
    k1, k2, k3, k4, k5, k6 = jax.random.split(key, 6)

    shape = (2, 4, 16, 16)
    y_pred = jax.random.normal(k1, shape, jnp.float32)
    theta = jax.nn.softplus(jax.random.normal(k2, shape, jnp.float32)) + 0.1
    pi = jax.nn.sigmoid(jax.random.normal(k3, shape, jnp.float32))
    # zero-inflated targets: ~40% exact zeros
    zeros = jax.random.bernoulli(k4, 0.4, shape)
    y_true = jnp.where(zeros, 0.0,
                       jnp.abs(jax.random.normal(k5, shape, jnp.float32)) + 0.5)
    mask = jax.random.bernoulli(k6, 0.5, shape)
    lamda = 0.1
    eps = 1e-10

    def ref_loss(y_pred, theta, pi, y_true, lamda, mask=None, reduction="none"):
        if mask is not None:
            y_true = y_true[mask]
            y_pred = y_pred[mask]
            theta = theta[mask]
            pi = pi[mask]
        theta_c = jnp.minimum(theta, 1.0e6)
        t1n = -jnp.log(1.0 - pi)
        t2n = (-0.5 * jnp.log(2.0 * _CONST_PI * theta_c)
               - jnp.square(y_true - y_pred) / (2.0 * theta_c + eps))
        norm_case = t1n - t2n
        zero_norm = (1.0 / jnp.sqrt(2.0 * pi * theta + eps)) * jnp.exp(
            -0.5 * (0.0 - y_pred) ** 2 / theta + eps)
        zero_case = -jnp.log(pi + (1.0 - pi) * zero_norm + eps)
        t1 = jnp.where(y_true < 1e-08, zero_case, norm_case)
        loss = t1 + lamda * jnp.square(pi)
        if reduction == "mean":
            return loss.mean()
        if reduction == "sum":
            return loss.sum()
        return loss

    # reduction='none' (module default)
    out_none = zinorm_loss(y_pred, theta, pi, y_true, lamda,
                           reduction="none", eps=eps)
    jax.block_until_ready(out_none)
    assert out_none.shape == shape
    assert jnp.allclose(out_none, ref_loss(y_pred, theta, pi, y_true, lamda),
                        atol=1e-4, rtol=1e-4)

    # reduction='mean' / 'sum' without mask
    out_mean = zinorm_loss(y_pred, theta, pi, y_true, lamda,
                           reduction="mean", eps=eps)
    jax.block_until_ready(out_mean)
    assert jnp.allclose(out_mean,
                        ref_loss(y_pred, theta, pi, y_true, lamda,
                                 reduction="mean"),
                        atol=1e-4, rtol=1e-4)

    out_sum = zinorm_loss(y_pred, theta, pi, y_true, lamda,
                          reduction="sum", eps=eps)
    jax.block_until_ready(out_sum)
    assert jnp.allclose(out_sum,
                        ref_loss(y_pred, theta, pi, y_true, lamda,
                                 reduction="sum"),
                        atol=1e-3, rtol=1e-4)

    # reduction='mean' / 'sum' with mask (torch.masked_select semantics)
    out_mean_m = zinorm_loss(y_pred, theta, pi, y_true, lamda, mask=mask,
                             reduction="mean", eps=eps)
    jax.block_until_ready(out_mean_m)
    assert jnp.allclose(out_mean_m,
                        ref_loss(y_pred, theta, pi, y_true, lamda, mask=mask,
                                 reduction="mean"),
                        atol=1e-4, rtol=1e-4)

    out_sum_m = zinorm_loss(y_pred, theta, pi, y_true, lamda, mask=mask,
                            reduction="sum", eps=eps)
    jax.block_until_ready(out_sum_m)
    assert jnp.allclose(out_sum_m,
                        ref_loss(y_pred, theta, pi, y_true, lamda, mask=mask,
                                 reduction="sum"),
                        atol=1e-3, rtol=1e-4)

    print("KERNEL_OK")
</pallas_src>

<mosaic_0001>
module attributes {stable_mosaic.version = 11 : i64} {
  func.func @_zinorm_none_kernel(%arg0: i32, %arg1: memref<16x128xf32, #tpu.memory_space<vmem>>, %arg2: memref<16x128xf32, #tpu.memory_space<vmem>>, %arg3: memref<16x128xf32, #tpu.memory_space<vmem>>, %arg4: memref<16x128xf32, #tpu.memory_space<vmem>>, %arg5: memref<16x128xf32, #tpu.memory_space<vmem>>) attributes {dimension_semantics = [#tpu.dimension_semantics<parallel>], iteration_bounds = array<i64: 1>, scalar_prefetch = 0 : i64, scratch_operands = 0 : i64, tpu.core_type = #tpu.core_type<tc>, window_params = [{transform_indices = @transform_0, window_bounds = array<i64: 16, 128>}, {transform_indices = @transform_1, window_bounds = array<i64: 16, 128>}, {transform_indices = @transform_2, window_bounds = array<i64: 16, 128>}, {transform_indices = @transform_3, window_bounds = array<i64: 16, 128>}, {transform_indices = @transform_4, window_bounds = array<i64: 16, 128>}]} {
    %c0 = arith.constant 0 : index
    %c0_0 = arith.constant 0 : index
    %0 = vector.load %arg1[%c0, %c0_0] : memref<16x128xf32, #tpu.memory_space<vmem>>, vector<16x128xf32>
    %c0_1 = arith.constant 0 : index
    %c0_2 = arith.constant 0 : index
    %1 = vector.load %arg2[%c0_1, %c0_2] : memref<16x128xf32, #tpu.memory_space<vmem>>, vector<16x128xf32>
    %c0_3 = arith.constant 0 : index
    %c0_4 = arith.constant 0 : index
    %2 = vector.load %arg3[%c0_3, %c0_4] : memref<16x128xf32, #tpu.memory_space<vmem>>, vector<16x128xf32>
    %c0_5 = arith.constant 0 : index
    %c0_6 = arith.constant 0 : index
    %3 = vector.load %arg4[%c0_5, %c0_6] : memref<16x128xf32, #tpu.memory_space<vmem>>, vector<16x128xf32>
    %cst = arith.constant 1.000000e+06 : f32
    %4 = vector.broadcast %cst : f32 to vector<16x128xf32>
    %5 = arith.minimumf %1, %4 : vector<16x128xf32>
    %cst_7 = arith.constant 1.000000e+00 : f32
    %6 = vector.broadcast %cst_7 : f32 to vector<16x128xf32>
    %7 = arith.subf %6, %2 : vector<16x128xf32>
    %8 = math.log %7 : vector<16x128xf32>
    %cst_8 = arith.constant 0.000000e+00 : f32
    %9 = vector.broadcast %cst_8 : f32 to vector<16x128xf32>
    %10 = arith.subf %9, %8 : vector<16x128xf32>
    %cst_9 = arith.constant 6.28318548 : f32
    %11 = vector.broadcast %cst_9 : f32 to vector<16x128xf32>
    %12 = arith.mulf %11, %5 : vector<16x128xf32>
    %13 = math.log %12 : vector<16x128xf32>
    %cst_10 = arith.constant -5.000000e-01 : f32
    %14 = vector.broadcast %cst_10 : f32 to vector<16x128xf32>
    %15 = arith.mulf %14, %13 : vector<16x128xf32>
    %16 = arith.subf %3, %0 : vector<16x128xf32>
    %17 = arith.mulf %16, %16 : vector<16x128xf32>
    %cst_11 = arith.constant 2.000000e+00 : f32
    %18 = vector.broadcast %cst_11 : f32 to vector<16x128xf32>
    %19 = arith.mulf %18, %5 : vector<16x128xf32>
    %cst_12 = arith.constant 1.000000e-10 : f32
    %20 = vector.broadcast %cst_12 : f32 to vector<16x128xf32>
    %21 = arith.addf %19, %20 : vector<16x128xf32>
    %22 = arith.divf %17, %21 : vector<16x128xf32>
    %23 = arith.subf %15, %22 : vector<16x128xf32>
    %24 = arith.subf %10, %23 : vector<16x128xf32>
    %cst_13 = arith.constant 2.000000e+00 : f32
    %25 = vector.broadcast %cst_13 : f32 to vector<16x128xf32>
    %26 = arith.mulf %25, %2 : vector<16x128xf32>
    %27 = arith.mulf %26, %1 : vector<16x128xf32>
    %cst_14 = arith.constant 1.000000e-10 : f32
    %28 = vector.broadcast %cst_14 : f32 to vector<16x128xf32>
    %29 = arith.addf %27, %28 : vector<16x128xf32>
    %30 = math.sqrt %29 : vector<16x128xf32>
    %cst_15 = arith.constant 1.000000e+00 : f32
    %31 = vector.broadcast %cst_15 : f32 to vector<16x128xf32>
    %32 = arith.divf %31, %30 : vector<16x128xf32>
    %cst_16 = arith.constant 0.000000e+00 : f32
    %33 = vector.broadcast %cst_16 : f32 to vector<16x128xf32>
    %34 = arith.subf %33, %0 : vector<16x128xf32>
    %35 = arith.mulf %34, %34 : vector<16x128xf32>
    %cst_17 = arith.constant -5.000000e-01 : f32
    %36 = vector.broadcast %cst_17 : f32 to vector<16x128xf32>
    %37 = arith.mulf %36, %35 : vector<16x128xf32>
    %38 = arith.divf %37, %1 : vector<16x128xf32>
    %cst_18 = arith.constant 1.000000e-10 : f32
    %39 = vector.broadcast %cst_18 : f32 to vector<16x128xf32>
    %40 = arith.addf %38, %39 : vector<16x128xf32>
    %41 = math.exp %40 : vector<16x128xf32>
    %42 = arith.mulf %32, %41 : vector<16x128xf32>
    %cst_19 = arith.constant 1.000000e+00 : f32
    %43 = vector.broadcast %cst_19 : f32 to vector<16x128xf32>
    %44 = arith.subf %43, %2 : vector<16x128xf32>
    %45 = arith.mulf %44, %42 : vector<16x128xf32>
    %46 = arith.addf %2, %45 : vector<16x128xf32>
    %cst_20 = arith.constant 1.000000e-10 : f32
    %47 = vector.broadcast %cst_20 : f32 to vector<16x128xf32>
    %48 = arith.addf %46, %47 : vector<16x128xf32>
    %49 = math.log %48 : vector<16x128xf32>
    %cst_21 = arith.constant 0.000000e+00 : f32
    %50 = vector.broadcast %cst_21 : f32 to vector<16x128xf32>
    %51 = arith.subf %50, %49 : vector<16x128xf32>
    %cst_22 = arith.constant 9.99999993E-9 : f32
    %52 = vector.broadcast %cst_22 : f32 to vector<16x128xf32>
    %53 = arith.cmpf olt, %3, %52 : vector<16x128xf32>
    %54 = arith.select %53, %51, %24 : vector<16x128xi1>, vector<16x128xf32>
    %55 = arith.mulf %2, %2 : vector<16x128xf32>
    %cst_23 = arith.constant 1.000000e-01 : f32
    %56 = vector.broadcast %cst_23 : f32 to vector<16x128xf32>
    %57 = arith.mulf %56, %55 : vector<16x128xf32>
    %58 = arith.addf %54, %57 : vector<16x128xf32>
    %c0_24 = arith.constant 0 : index
    %c0_25 = arith.constant 0 : index
    %59 = vector.load %arg5[%c0_24, %c0_25] : memref<16x128xf32, #tpu.memory_space<vmem>>, vector<16x128xf32>
    tpu.vector_store %arg5[%c0_24, %c0_25], %58 {strides = array<i32>} : memref<16x128xf32, #tpu.memory_space<vmem>>, vector<16x128xf32>,
    return
  }
  func.func @transform_0(%arg0: i32) -> (i32, i32) {
    %c0_i32 = arith.constant 0 : i32
    %c0_i32_0 = arith.constant 0 : i32
    return %arg0, %c0_i32 : i32, i32
  }
  func.func @transform_1(%arg0: i32) -> (i32, i32) {
    %c0_i32 = arith.constant 0 : i32
    %c0_i32_0 = arith.constant 0 : i32
    return %arg0, %c0_i32 : i32, i32
  }
  func.func @transform_2(%arg0: i32) -> (i32, i32) {
    %c0_i32 = arith.constant 0 : i32
    %c0_i32_0 = arith.constant 0 : i32
    return %arg0, %c0_i32 : i32, i32
  }
  func.func @transform_3(%arg0: i32) -> (i32, i32) {
    %c0_i32 = arith.constant 0 : i32
    %c0_i32_0 = arith.constant 0 : i32
    return %arg0, %c0_i32 : i32, i32
  }
  func.func @transform_4(%arg0: i32) -> (i32, i32) {
    %c0_i32 = arith.constant 0 : i32
    %c0_i32_0 = arith.constant 0 : i32
    return %arg0, %c0_i32 : i32, i32
  }
}

</mosaic_0001>

<bundles_post_ra>
// kernel: tpu_custom_call.1
= control target key start
LH: loop header
LB: loop body
LE: loop exit
PB: predicated region body
PF: predicated region fallthrough
CT: control target
= control target key end

     0   :  { %9 = vsyncpa [#allocation3], 0  ;;  %s500_s0 = inlined_call_operand.hbm [shape: f32[16,128], index: 0, kind: input, shape index: {}]   ;;  %s501_s1 = inlined_call_operand.hbm [shape: f32[16,128], index: 1, kind: input, shape index: {}]   ;;  %s502_s2 = inlined_call_operand.hbm [shape: f32[16,128], index: 2, kind: input, shape index: {}]   ;;  %s503_s3 = inlined_call_operand.hbm [shape: f32[16,128], index: 3, kind: input, shape index: {}]   ;;  %s504_s4 = inlined_call_operand.hbm [shape: f32[16,128], index: 4, kind: output, shape index: {}]  }
   0x1   :  { %10 = vsyncpa [#allocation6], 0 }
   0x2   :  { %11 = vsyncpa [#allocation9], 0 }
   0x3   :  { %12 = vsyncpa [#allocation4], 0  ;;  %s357_s15 = smov [#allocation5]   ;;  %s358_s17 = smov [#allocation2]  }
   0x4   :  { %s30_s16 = sshll.u32 %s357_s15, 4  ;;  %s18_s18 = sshll.u32 %s358_s17, 4  ;;  %s31_s16 = int_to_ptr.vmem [resolvable:$true] %s30_s16  ;;  %s389_s18 = int_to_ptr.vmem [resolvable:$true] %s18_s18 }
   0x5   :  { %s239_s21 = scalar_lea.hbm %s501_s1, 256 }
   0x6   :  { %p240_p0 = scmp.ne.s32.totalorder %s501_s1, %s239_s21  ;;  %p243_p1 = scmp.lt.u32.totalorder %s239_s21, %s501_s1 }
   0x8   :  { %p245_p2 = pnand %p243_p1, %p240_p0 }
   0xa   :  { %248 = shalt.err (!%p245_p2)
}
   0xb   :  { %s249_s26 = scalar_lea.vmem %s31_s16, 256  ;;  %p254_p4 = scmp.lt.s32.totalorder %s31_s16, %s31_s16 }
   0xc   :  { %p250_p3 = scmp.ne.s32.totalorder %s31_s16, %s249_s26  ;;  %p255_p5 = scmp.lt.s32.totalorder %s249_s26, %s249_s26 }
   0xe   :  { %p256_p6 = por %p255_p5, %p254_p4 }
  0x10   :  { %p257_p7 = pnand %p256_p6, %p250_p3 }
  0x12   :  { %260 = shalt.err (!%p257_p7)
}
  0x13   :  { %s359_s27 = smov 128   ;;  %s360_s28 = smov 8  }
  0x14   :  { %36 = dma.hbm_to_vmem [thread:$0]  %s501_s1, 256, %s31_s16, [#allocation6], %s359_s27, %s359_s27, %s360_s28  }
  0x15   :  { %s261_s7 = scalar_lea.hbm %s500_s0, 256 }
  0x16   :  { %p262_p8 = scmp.ne.s32.totalorder %s500_s0, %s261_s7  ;;  %p265_p9 = scmp.lt.u32.totalorder %s261_s7, %s500_s0 }
  0x18   :  { %p267_p10 = pnand %p265_p9, %p262_p8 }
  0x1a   :  { %270 = shalt.err (!%p267_p10)
}
  0x1b   :  { %s271_s12 = scalar_lea.vmem %s389_s18, 256  ;;  %p276_p12 = scmp.lt.s32.totalorder %s389_s18, %s389_s18 }
  0x1c   :  { %p272_p11 = scmp.ne.s32.totalorder %s389_s18, %s271_s12  ;;  %p277_p13 = scmp.lt.s32.totalorder %s271_s12, %s271_s12 }
  0x1e   :  { %p278_p0 = por %p277_p13, %p276_p12 }
  0x20   :  { %p279_p1 = pnand %p278_p0, %p272_p11 }
  0x22   :  { %282 = shalt.err (!%p279_p1)
}
  0x23   :  { %24 = dma.hbm_to_vmem [thread:$0]  %s500_s0, 256, %s389_s18, [#allocation3], %s359_s27, %s359_s27, %s360_s28  }
  0x24   :  { %s361_s14 = smov [#allocation7]   ;;  %s362_s16 = smov [#allocation8]  }
  0x25   :  { %s42_s15 = sshll.u32 %s361_s14, 4  ;;  %s54_s17 = sshll.u32 %s362_s16, 4  ;;  %s43_s15 = int_to_ptr.vmem [resolvable:$true] %s42_s15  ;;  %s426_s17 = int_to_ptr.vmem [resolvable:$true] %s54_s17 }
  0x26   :  { %s283_s21 = scalar_lea.hbm %s502_s2, 256 }
  0x27   :  { %p284_p2 = scmp.ne.s32.totalorder %s502_s2, %s283_s21  ;;  %p287_p3 = scmp.lt.u32.totalorder %s283_s21, %s502_s2 }
  0x29   :  { %p289_p4 = pnand %p287_p3, %p284_p2 }
  0x2b   :  { %292 = shalt.err (!%p289_p4)
}
  0x2c   :  { %s293_s0 = scalar_lea.vmem %s43_s15, 256  ;;  %p298_p6 = scmp.lt.s32.totalorder %s43_s15, %s43_s15 }
  0x2d   :  { %p294_p5 = scmp.ne.s32.totalorder %s43_s15, %s293_s0  ;;  %p299_p7 = scmp.lt.s32.totalorder %s293_s0, %s293_s0 }
  0x2f   :  { %p300_p8 = por %p299_p7, %p298_p6 }
  0x31   :  { %p301_p9 = pnand %p300_p8, %p294_p5 }
  0x33   :  { %304 = shalt.err (!%p301_p9)
}
  0x34   :  { %48 = dma.hbm_to_vmem [thread:$0]  %s502_s2, 256, %s43_s15, [#allocation6], %s359_s27, %s359_s27, %s360_s28  }
  0x35   :  { %s305_s5 = scalar_lea.hbm %s503_s3, 256 }
  0x36   :  { %p306_p10 = scmp.ne.s32.totalorder %s503_s3, %s305_s5  ;;  %p309_p11 = scmp.lt.u32.totalorder %s305_s5, %s503_s3 }
  0x38   :  { %p311_p12 = pnand %p309_p11, %p306_p10 }
  0x3a   :  { %314 = shalt.err (!%p311_p12)
}
  0x3b   :  { %s315_s10 = scalar_lea.vmem %s426_s17, 256  ;;  %p320_p0 = scmp.lt.s32.totalorder %s426_s17, %s426_s17 }
  0x3c   :  { %p316_p13 = scmp.ne.s32.totalorder %s426_s17, %s315_s10  ;;  %p321_p1 = scmp.lt.s32.totalorder %s315_s10, %s315_s10 }
  0x3e   :  { %p322_p2 = por %p321_p1, %p320_p0 }
  0x40   :  { %p323_p3 = pnand %p322_p2, %p316_p13 }
  0x42   :  { %326 = shalt.err (!%p323_p3)
}
  0x43   :  { %60 = dma.hbm_to_vmem [thread:$0]  %s503_s3, 256, %s426_s17, [#allocation9], %s359_s27, %s359_s27, %s360_s28  }
  0x44   :  { %349 = dma.done.wait [#allocation3], 256  }
  0x45   :  { %350 = vsyncadd [#allocation3], 4294967040 }
  0x46   :  { %351 = dma.done.wait [#allocation6], 512  }
  0x47   :  { %352 = vsyncadd [#allocation6], 4294966784 }
  0x48   :  { %353 = dma.done.wait [#allocation9], 256  }
  0x49   :  { %354 = vsyncadd [#allocation9], 4294967040  ;;  %v463_v0 = vld [vmem:[#allocation2] sm:$0xff]  ;;  %v75_v1 = vld [vmem:[#allocation5] sm:$0xff]  ;;  %s363_s3 = smov [#allocation10]  }
  0x4a   :  { %v465_v2 = vld [vmem:[#allocation7] sm:$0xff]  ;;  %v139_v4 = vsub.f32 0.0, %v463_v0  ;;  %207 = vrcp.f32 %v75_v1  ;;  %v469_v8 = vld [vmem:[#allocation7 + $0x8] sm:$0xff]  ;;  %v76_v9 = vld [vmem:[#allocation5 + $0x8] sm:$0xff]  ;;  %v81_v25 = vmin.f32 %v75_v1, 1000000.0 }
  0x4b   :  { %v115_v3 = vmul.f32 2.0, %v465_v2  ;;  %v471_v10 = vld [vmem:[#allocation2 + $0x8] sm:$0xff]  ;;  %v116_v11 = vmul.f32 2.0, %v469_v8  ;;  %v82_v36 = vmin.f32 %v76_v9, 1000000.0  ;;  %v83_v41 = vsub.f32 1.0, %v465_v2 }
  0x4c   :  { %v141_v7 = vmul.f32 %v139_v4, %v139_v4  ;;  %v140_v14 = vsub.f32 0.0, %v471_v10  ;;  %v91_v31 = vmul.f32 6.2831855, %v81_v25  ;;  %v103_v32 = vmul.f32 2.0, %v81_v25  ;;  %v79_v46 = vld [vmem:[#allocation8] sm:$0xff]  ;;  %v80_v60 = vld [vmem:[#allocation8 + $0x8] sm:$0xff] }
  0x4d   :  { %v117_v5 = vmul.f32 %v115_v3, %v75_v1  ;;  %v118_v13 = vmul.f32 %v116_v11, %v76_v9  ;;  %v92_v43 = vmul.f32 6.2831855, %v82_v36  ;;  %v104_v44 = vmul.f32 2.0, %v82_v36  ;;  %s186_s12 = sshll.u32 %s363_s3, 4  ;;  %s187_s12 = int_to_ptr.vmem [resolvable:$true] %s186_s12 }
  0x4e   :  { %v143_v12 = vmul.f32 -0.5, %v141_v7  ;;  %v142_v19 = vmul.f32 %v140_v14, %v140_v14  ;;  %v105_v39 = vadd.f32 1e-10, %v103_v32  ;;  %v84_v50 = vsub.f32 1.0, %v469_v8  ;;  %s327_s1 = scalar_lea.vmem %s187_s12, 256  ;;  %p332_p5 = scmp.lt.s32.totalorder %s187_s12, %s187_s12 }
  0x4f   :  { %v119_v6 = vadd.f32 1e-10, %v117_v5  ;;  %v120_v16 = vadd.f32 1e-10, %v118_v13  ;;  %v106_v48 = vadd.f32 1e-10, %v104_v44  ;;  %v99_v51 = vsub.f32 %v79_v46, %v463_v0  ;;  %p328_p4 = scmp.ne.s32.totalorder %s187_s12, %s327_s1  ;;  %p333_p6 = scmp.lt.s32.totalorder %s327_s1, %s327_s1 }
  0x50   :  { %v144_v24 = vmul.f32 -0.5, %v142_v19  ;;  %v100_v1 = vsub.f32 %v80_v60, %v471_v10  ;;  %vm169_vm4 = vcmp.lt.f32.partialorder %v79_v46, 1e-08  ;;  %vm170_vm5 = vcmp.lt.f32.partialorder %v80_v60, 1e-08 }
  0x51   :  { %209 = vrsqrt.f32 %v119_v6  ;;  %vm123_vm0 = vcmp.eq.f32.partialorder %v119_v6, inf  ;;  %v126_v22 = vand.u32 2147483648, %v119_v6  ;;  %vm125_vm1 = vcmp.eq.f32.partialorder %v119_v6, 0.0  ;;  %p334_p7 = por %p333_p6, %p332_p5 }
  0x52   :  { %211 = vrcp.f32 %v76_v9  ;;  %vm130_vm2 = vcmp.eq.f32.partialorder %v120_v16, inf  ;;  %v133_v33 = vand.u32 2147483648, %v120_v16  ;;  %vm132_vm3 = vcmp.eq.f32.partialorder %v120_v16, 0.0 }
  0x53   :  { %213 = vrsqrt.f32 %v120_v16  ;;  %v101_v59 = vmul.f32 %v99_v51, %v99_v51  ;;  %p335_p8 = pnand %p334_p7, %p328_p4 }
  0x54   :  { %v208_v15 = vpop.eup %207 }
  0x55   :  { %v146_v17 = vmul.f32 %v208_v15, %v143_v12  ;;  %v102_v12 = vmul.f32 %v100_v1, %v100_v1 }
  0x57   :  { %v149_v18 = vadd.f32 1e-10, %v146_v17 }
  0x59   :  { %v151_v20 = vmul.f32 1.442695, %v149_v18 }
  0x5b   :  { %v210_v21 = vpop.eup %209  ;;  %215 = vpow2.f32 %v151_v20 }
  0x5c   :  { %v122_v23 = vmul.f32 %v210_v21, %v119_v6  ;;  %v212_v27 = vpop.eup %211 }
  0x5d   :  { %v148_v29 = vmul.f32 %v212_v27, %v144_v24  ;;  %v214_v30 = vpop.eup %213  ;;  %v174_v27 = vmul.f32 %v469_v8, %v469_v8 }
  0x5e   :  { %v124_v26 = vsel %vm123_vm0, %v119_v6, %v122_v23  ;;  %v129_v34 = vmul.f32 %v214_v30, %v120_v16 }
  0x5f   :  { %v127_v28 = vsel %vm125_vm1, %v126_v22, %v124_v26  ;;  %v150_v35 = vadd.f32 1e-10, %v148_v29 }
  0x60   :  { %217 = vrcp.f32 %v127_v28  ;;  %v131_v37 = vsel %vm130_vm2, %v120_v16, %v129_v34  ;;  %v173_v16 = vmul.f32 %v465_v2, %v465_v2 }
  0x61   :  { %v153_v38 = vmul.f32 1.442695, %v150_v35  ;;  %219 = vlog2.f32 %v91_v31  ;;  %v134_v40 = vsel %vm132_vm3, %v133_v33, %v131_v37  ;;  %v176_v31 = vmul.f32 0.1, %v174_v27 }
  0x62   :  { %221 = vrcp.f32 %v134_v40  ;;  %v175_v22 = vmul.f32 0.1, %v173_v16 }
  0x63   :  { %223 = vpow2.f32 %v153_v38 }
  0x64   :  { %225 = vlog2.f32 %v83_v41 }
  0x65   :  { %v216_v42 = vpop.eup %215  ;;  %227 = vrcp.f32 %v105_v39 }
  0x66   :  { %229 = vlog2.f32 %v92_v43 }
  0x67   :  { %231 = vlog2.f32 %v84_v50 }
  0x68   :  { %233 = vrcp.f32 %v106_v48 }
  0x6a   :  { %v218_v45 = vpop.eup %217 }
  0x6b   :  { %v155_v47 = vmul.f32 %v218_v45, %v216_v42  ;;  %v220_v52 = vpop.eup %219 }
  0x6c   :  { %v222_v54 = vpop.eup %221  ;;  %v94_v58 = vmul.f32 0.6931472, %v220_v52 }
  0x6d   :  { %v157_v49 = vmul.f32 %v155_v47, %v83_v41  ;;  %v224_v55 = vpop.eup %223 }
  0x6e   :  { %v226_v57 = vpop.eup %225  ;;  %v156_v61 = vmul.f32 %v224_v55, %v222_v54  ;;  %v97_v4 = vmul.f32 -0.5, %v94_v58 }
  0x6f   :  { %v159_v53 = vadd.f32 %v157_v49, %v465_v2  ;;  %v228_v62 = vpop.eup %227  ;;  %v86_v0 = vmul.f32 0.6931472, %v226_v57 }
  0x70   :  { %v158_v63 = vmul.f32 %v156_v61, %v84_v50  ;;  %v230_v3 = vpop.eup %229  ;;  %v108_v5 = vmul.f32 %v228_v62, %v101_v59 }
  0x71   :  { %v161_v56 = vadd.f32 1e-10, %v159_v53  ;;  %v232_v9 = vpop.eup %231  ;;  %v96_v11 = vmul.f32 0.6931472, %v230_v3  ;;  %v89_v14 = vsub.f32 0.0, %v86_v0 }
  0x72   :  { %v160_v6 = vadd.f32 %v158_v63, %v469_v8  ;;  %v234_v13 = vpop.eup %233  ;;  %v111_v15 = vsub.f32 %v97_v4, %v108_v5  ;;  %v88_v18 = vmul.f32 0.6931472, %v232_v9 }
  0x73   :  { %235 = vlog2.f32 %v161_v56  ;;  %v98_v10 = vmul.f32 -0.5, %v96_v11  ;;  %v110_v19 = vmul.f32 %v234_v13, %v102_v12 }
  0x74   :  { %v162_v7 = vadd.f32 1e-10, %v160_v6  ;;  %v113_v20 = vsub.f32 %v89_v14, %v111_v15  ;;  %v90_v24 = vsub.f32 0.0, %v88_v18 }
  0x75   :  { %v112_v25 = vsub.f32 %v98_v10, %v110_v19 }
  0x76   :  { %237 = vlog2.f32 %v162_v7 }
  0x77   :  { %v114_v30 = vsub.f32 %v90_v24, %v112_v25 }
  0x7d   :  { %v236_v17 = vpop.eup %235 }
  0x7e   :  { %v164_v21 = vmul.f32 0.6931472, %v236_v17 }
  0x80   :  { %v167_v23 = vsub.f32 0.0, %v164_v21  ;;  %v238_v29 = vpop.eup %237 }
  0x81   :  { %v166_v2 = vmul.f32 0.6931472, %v238_v29 }
  0x82   :  { %v171_v26 = vsel %vm169_vm4, %v167_v23, %v113_v20 }
  0x83   :  { %v177_v28 = vadd.f32 %v175_v22, %v171_v26  ;;  %v168_v32 = vsub.f32 0.0, %v166_v2 }
  0x85   :  { %179 = vst [vmem:[#allocation10] sm:$0xff] %v177_v28  ;;  %v172_v33 = vsel %vm170_vm5, %v168_v32, %v114_v30 }
  0x86   :  { %v178_v34 = vadd.f32 %v176_v31, %v172_v33 }
  0x88   :  { %180 = vst [vmem:[#allocation10 + $0x8] sm:$0xff] %v178_v34 }
  0x89   :  { %338 = shalt.err (!%p335_p8)
}
  0x8a   :  { %s339_s15 = scalar_lea.hbm %s504_s4, 256 }
  0x8b   :  { %p340_p9 = scmp.ne.s32.totalorder %s504_s4, %s339_s15  ;;  %p343_p10 = scmp.lt.u32.totalorder %s339_s15, %s504_s4 }
  0x8d   :  { %p345_p11 = pnand %p343_p10, %p340_p9 }
  0x8f   :  { %348 = shalt.err (!%p345_p11)
}
  0x90   :  { %192 = dma.vmem_to_hbm [thread:$0]  %s187_s12, 256, %s504_s4, [#allocation4], %s359_s27, %s359_s27, %s360_s28  }
  0x91   :  { %355 = dma.done.wait [#allocation4], 256  }
  0x92   :  { %356 = vsyncadd [#allocation4], 4294967040 }
  0x93   :  { %196 = vsyncpa [#allocation3], 1 }
  0x94   :  { %197 = vsyncpa [#allocation6], 1 }
  0x95   :  { %198 = vsyncpa [#allocation9], 1 }
  0x96   :  { %199 = vsyncpa [#allocation4], 1 }

</bundles_post_ra>
